<compile_context>
chip_gen: v7x
topology: tpu7x:2x2x1
jax: 0.10.0
libtpu: 0.0.40
codegen_flags: <defaults>
</compile_context>

<pallas_src>
import functools
import math

import jax
import jax.numpy as jnp
from jax import lax
from jax.experimental import pallas as pl
from jax.experimental.pallas import tpu as pltpu

_LANE = 128
_SUBLANE = 8
_VMEM_LIMIT_BYTES = 32 * 1024 * 1024         # safe scoped-VMEM limit on v5e/v6e/v7x
_DEFAULT_MAX_BLOCK_BYTES = 1 * 1024 * 1024   # ~1 MiB blocks: ~85% of HBM roofline
_TARGET_GRID_STEPS = 4                       # >= 2 per TC on v7x -> pipelining + megacore


def _round_up(x, m):
    return ((x + m - 1) // m) * m


def _stg_kernel(x_ref, eps_ref, mu_ref, gated_ref, *, std):
    """Gate one (TB, TN) tile.

    x_ref:     (TB, TN)  input tile
    eps_ref:   (TB, TN)  reparameterization noise tile, eps ~ N(0, 1)
    mu_ref:    (1,  TN)  gate means tile (broadcast over the batch rows)
    gated_ref: (TB, TN)  gated output tile
    """
    gates = jnp.clip(mu_ref[...] + std * eps_ref[...], 0.0, 1.0)   # hard-sigmoid rectify
    gated_ref[...] = (x_ref[...].astype(jnp.float32) * gates).astype(gated_ref.dtype)


def _pick_tiles(batch, n_gates, itemsize, max_block_bytes, target_steps):
    """Choose (tb, tn) block dims.

    tn is a multiple of 128 (or the full gate extent when it is smaller), tb is a
    multiple of 8 (or the full batch when it is smaller).  Blocks are bounded by
    `max_block_bytes` (counting sublane padding) AND capped so the grid has at least
    `target_steps` steps whenever the data allows it, so the single-giant-block
    degenerate case can never occur.
    """
    # --- gate-axis tile (lanes) ---
    if n_gates <= _LANE:
        tn = n_gates                                    # == full dim -> allowed
    else:
        n_cols = -(-n_gates // _LANE)                   # 128-lane columns (ceil)
        padded_tb = _SUBLANE if batch > _SUBLANE else _round_up(batch, _SUBLANE)
        budget_cols = max(1, max_block_bytes // (padded_tb * _LANE * itemsize))
        step_cols = max(1, n_cols // target_steps)      # keep >= target_steps along gates
        tn = _LANE * min(n_cols, budget_cols, step_cols)
    ng = -(-n_gates // tn)

    # --- batch-axis tile (sublanes) ---
    if batch <= _SUBLANE:
        tb = batch                                      # == full dim -> allowed
    else:
        budget_rows = max(1, max_block_bytes // (tn * itemsize))
        need_nb = max(1, -(-target_steps // ng))        # batch steps still needed
        cap_rows = max(1, batch // need_nb)
        tb = _SUBLANE * max(1, min(budget_rows, cap_rows, batch) // _SUBLANE)
    return tb, tn


def gate_active_probs(mu, std):
    """P(gate > 0) for Gaussian gates — mirrors _get_gate_active_probs()."""
    return 0.5 * (1.0 + lax.erf(mu / (std * math.sqrt(2.0))))


def get_gate_values(mu, clamp=True):
    """Mirrors StochasticGatesBase.get_gate_values (Gaussian: raw means)."""
    return jnp.clip(mu, 0.0, 1.0) if clamp else mu


def stochastic_gates_forward(x, mu, *, std=0.5, reg_weight=1.0, reg_reduction="sum",
                             seed=0, key=None,
                             max_block_bytes=_DEFAULT_MAX_BLOCK_BYTES,
                             target_steps=_TARGET_GRID_STEPS):
    """Forward pass of StochasticGatesBase (Gaussian gates, mask=None).

    x:   (B, ...) input; number of non-batch elements must equal n_gates
    mu:  (n_gates,) learned gate means
    Returns (gated_input with x.shape, l0_reg).
    """
    batch = x.shape[0]
    n_gates = mu.shape[0]
    n_ele = math.prod(x.shape[1:])
    assert x.ndim > 1, x.shape
    assert n_ele == n_gates, (n_ele, n_gates)
    assert reg_reduction in ("none", "mean", "sum")

    x2d = x.reshape(batch, n_gates)           # contiguous view, no extra pass
    mu2d = mu.reshape(1, n_gates)

    # Reparameterization noise, drawn once per (example, gate) outside the kernel.
    if key is None:
        key = jax.random.PRNGKey(seed)
    eps = jax.random.normal(key, (batch, n_gates), dtype=jnp.float32)

    itemsize = jnp.dtype(jnp.float32).itemsize
    tb, tn = _pick_tiles(batch, n_gates, itemsize, max_block_bytes, target_steps)
    grid = (pl.cdiv(batch, tb), pl.cdiv(n_gates, tn))

    kernel = functools.partial(_stg_kernel, std=float(std))
    gated2d = pl.pallas_call(
        kernel,
        out_shape=jax.ShapeDtypeStruct((batch, n_gates), x.dtype),
        grid=grid,
        in_specs=[
            pl.BlockSpec((tb, tn), lambda b, g: (b, g)),   # x
            pl.BlockSpec((tb, tn), lambda b, g: (b, g)),   # eps
            pl.BlockSpec((1, tn), lambda b, g: (0, g)),    # mu (shared across batch)
        ],
        out_specs=pl.BlockSpec((tb, tn), lambda b, g: (b, g)),
        compiler_params=pltpu.CompilerParams(
            dimension_semantics=("parallel", "parallel"),  # no carried state
            vmem_limit_bytes=_VMEM_LIMIT_BYTES,
        ),
    )(x2d, eps, mu2d)

    gated = gated2d.reshape(x.shape)

    # L0 regularization term: depends only on mu -> computed cheaply in plain JAX.
    probs = gate_active_probs(mu, std)
    if reg_reduction == "sum":
        l0_reg = probs.sum()
    elif reg_reduction == "mean":
        l0_reg = probs.mean()
    else:
        l0_reg = probs
    l0_reg = l0_reg * reg_weight
    return gated, l0_reg


def _reference_forward(x, mu, std, reg_weight, reg_reduction, seed):
    """Pure-JAX reference with the exact same noise draw as the kernel wrapper."""
    batch = x.shape[0]
    n_gates = mu.shape[0]
    eps = jax.random.normal(jax.random.PRNGKey(seed), (batch, n_gates), jnp.float32)
    gates = jnp.clip(mu[None, :] + std * eps, 0.0, 1.0)
    gated = (x.reshape(batch, n_gates).astype(jnp.float32) * gates).reshape(x.shape)
    probs = gate_active_probs(mu, std)
    if reg_reduction == "sum":
        l0 = probs.sum()
    elif reg_reduction == "mean":
        l0 = probs.mean()
    else:
        l0 = probs
    return gated.astype(x.dtype), l0 * reg_weight


if __name__ == "__main__":
    root = jax.random.PRNGKey(0)
    k_x1, k_mu1, k_x2, k_mu2, k_x3, k_mu3 = jax.random.split(root, 6)
    std, reg_weight = 0.5, 1.0

    # ---- Config 1: small NCHW, n_gates = C*H*W = 1024 ------------------------------
    B, C, H, W = 2, 4, 16, 16
    n_gates = C * H * W
    x = jax.random.normal(k_x1, (B, C, H, W), dtype=jnp.float32)
    mu = 0.5 + 0.01 * jax.random.normal(k_mu1, (n_gates,), dtype=jnp.float32)

    gated, l0 = stochastic_gates_forward(x, mu, std=std, reg_weight=reg_weight, seed=42)
    jax.block_until_ready((gated, l0))

    assert gated.shape == x.shape
    gated_ref, l0_ref = _reference_forward(x, mu, std, reg_weight, "sum", 42)
    assert jnp.allclose(gated, gated_ref, atol=1e-5, rtol=1e-5)
    assert jnp.allclose(l0, l0_ref, atol=1e-4, rtol=1e-5)
    # Implied gate values lie in [0, 1] (hard-sigmoid rectified).
    safe = jnp.abs(x) > 1e-6
    g = jnp.where(safe, gated / jnp.where(safe, x, 1.0), 0.5)
    assert bool(jnp.all(jnp.isfinite(g)))
    assert bool(jnp.all(g >= -1e-4)) and bool(jnp.all(g <= 1.0 + 1e-4))
    # Deterministic for a fixed seed (noise keyed on seed only, not on tiling).
    gated_again, _ = stochastic_gates_forward(x, mu, std=std, reg_weight=reg_weight, seed=42)
    assert bool(jnp.array_equal(gated, gated_again))

    # ---- Config 2: larger n_gates with a small block budget -> many grid steps -----
    B2, C2, H2, W2 = 2, 8, 32, 32            # n_gates = 8192
    n_gates2 = C2 * H2 * W2
    x2 = jax.random.normal(k_x2, (B2, C2, H2, W2), dtype=jnp.float32)
    mu2 = 0.3 + 0.05 * jax.random.normal(k_mu2, (n_gates2,), dtype=jnp.float32)
    gated2, l0_2 = stochastic_gates_forward(
        x2, mu2, std=std, reg_weight=reg_weight, seed=7,
        max_block_bytes=8 * 512 * 4)          # forces tn=512 -> 16 pipelined grid steps
    jax.block_until_ready((gated2, l0_2))
    gated2_ref, l0_2_ref = _reference_forward(x2, mu2, std, reg_weight, "sum", 7)
    assert jnp.allclose(gated2, gated2_ref, atol=1e-5, rtol=1e-5)
    assert jnp.allclose(l0_2, l0_2_ref, atol=1e-3, rtol=1e-5)

    # ---- Config 3: ragged n_gates (not a multiple of 128) -> no pad, partial block --
    B3, C3, L3 = 2, 8, 25                     # n_gates = 200
    n_gates3 = C3 * L3
    x3 = jax.random.normal(k_x3, (B3, C3, L3), dtype=jnp.float32)
    mu3 = 0.4 + 0.02 * jax.random.normal(k_mu3, (n_gates3,), dtype=jnp.float32)
    gated3, l0_3 = stochastic_gates_forward(
        x3, mu3, std=std, reg_weight=reg_weight, reg_reduction="mean", seed=3)
    jax.block_until_ready((gated3, l0_3))
    gated3_ref, l0_3_ref = _reference_forward(x3, mu3, std, reg_weight, "mean", 3)
    assert jnp.allclose(gated3, gated3_ref, atol=1e-5, rtol=1e-5)
    assert jnp.allclose(l0_3, l0_3_ref, atol=1e-4, rtol=1e-5)

    print("KERNEL_OK")
</pallas_src>

<mosaic_0001>
module attributes {stable_mosaic.version = 11 : i64} {
  func.func @_stg_kernel(%arg0: i32, %arg1: i32, %arg2: memref<2x256xf32, #tpu.memory_space<vmem>>, %arg3: memref<2x256xf32, #tpu.memory_space<vmem>>, %arg4: memref<1x256xf32, #tpu.memory_space<vmem>>, %arg5: memref<2x256xf32, #tpu.memory_space<vmem>>) attributes {dimension_semantics = [#tpu.dimension_semantics<parallel>, #tpu.dimension_semantics<parallel>], iteration_bounds = array<i64: 1, 4>, scalar_prefetch = 0 : i64, scratch_operands = 0 : i64, tpu.core_type = #tpu.core_type<tc>, window_params = [{transform_indices = @transform_0, window_bounds = array<i64: 2, 256>}, {transform_indices = @transform_1, window_bounds = array<i64: 2, 256>}, {transform_indices = @transform_2, window_bounds = array<i64: 1, 256>}, {transform_indices = @transform_3, window_bounds = array<i64: 2, 256>}]} {
    %c0 = arith.constant 0 : index
    %c0_0 = arith.constant 0 : index
    %0 = vector.load %arg4[%c0, %c0_0] : memref<1x256xf32, #tpu.memory_space<vmem>>, vector<1x256xf32>
    %c0_1 = arith.constant 0 : index
    %c0_2 = arith.constant 0 : index
    %1 = vector.load %arg3[%c0_1, %c0_2] : memref<2x256xf32, #tpu.memory_space<vmem>>, vector<2x256xf32>
    %cst = arith.constant 5.000000e-01 : f32
    %2 = vector.broadcast %cst : f32 to vector<2x256xf32>
    %3 = arith.mulf %2, %1 : vector<2x256xf32>
    %4 = vector.broadcast %0 : vector<1x256xf32> to vector<2x256xf32>
    %5 = arith.addf %4, %3 : vector<2x256xf32>
    %cst_3 = arith.constant 0.000000e+00 : f32
    %cst_4 = arith.constant 1.000000e+00 : f32
    %6 = vector.broadcast %cst_3 : f32 to vector<2x256xf32>
    %7 = arith.maximumf %6, %5 : vector<2x256xf32>
    %8 = vector.broadcast %cst_4 : f32 to vector<2x256xf32>
    %9 = arith.minimumf %8, %7 : vector<2x256xf32>
    %c0_5 = arith.constant 0 : index
    %c0_6 = arith.constant 0 : index
    %10 = vector.load %arg2[%c0_5, %c0_6] : memref<2x256xf32, #tpu.memory_space<vmem>>, vector<2x256xf32>
    %11 = arith.mulf %10, %9 : vector<2x256xf32>
    %c0_7 = arith.constant 0 : index
    %c0_8 = arith.constant 0 : index
    %12 = vector.load %arg5[%c0_7, %c0_8] : memref<2x256xf32, #tpu.memory_space<vmem>>, vector<2x256xf32>
    tpu.vector_store %arg5[%c0_7, %c0_8], %11 {strides = array<i32>} : memref<2x256xf32, #tpu.memory_space<vmem>>, vector<2x256xf32>,
    return
  }
  func.func @transform_0(%arg0: i32, %arg1: i32) -> (i32, i32) {
    %c0_i32 = arith.constant 0 : i32
    return %arg0, %arg1 : i32, i32
  }
  func.func @transform_1(%arg0: i32, %arg1: i32) -> (i32, i32) {
    %c0_i32 = arith.constant 0 : i32
    return %arg0, %arg1 : i32, i32
  }
  func.func @transform_2(%arg0: i32, %arg1: i32) -> (i32, i32) {
    %c0_i32 = arith.constant 0 : i32
    %c0_i32_0 = arith.constant 0 : i32
    return %c0_i32, %arg1 : i32, i32
  }
  func.func @transform_3(%arg0: i32, %arg1: i32) -> (i32, i32) {
    %c0_i32 = arith.constant 0 : i32
    return %arg0, %arg1 : i32, i32
  }
}

</mosaic_0001>

<bundles_post_ra>
// kernel: tpu_custom_call.1
= control target key start
LH: loop header
LB: loop body
LE: loop exit
PB: predicated region body
PF: predicated region fallthrough
CT: control target
= control target key end

     0   :  { %s1034_s0 = inlined_call_operand.hbm [shape: f32[2,1024], index: 0, kind: input, shape index: {}]   ;;  %s1035_s1 = inlined_call_operand.hbm [shape: f32[2,1024], index: 1, kind: input, shape index: {}]   ;;  %s1036_s2 = inlined_call_operand.hbm [shape: f32[1,1024], index: 2, kind: input, shape index: {}]   ;;  %s1037_s3 = inlined_call_operand.hbm [shape: f32[2,1024], index: 3, kind: output, shape index: {}]  }
   0x1   :  { %1044 = sst [smem:[#allocation15_spill]] %s1034_s0 }
   0x2   :  { %1045 = sst [smem:[#allocation16_spill]] %s1035_s1 }
   0x3   :  { %8 = vsyncpa [#allocation3], 0 }
   0x4   :  { %10 = vsyncpa [#allocation3 + $0x1], 0 }
   0x5   :  { %11 = vsyncpa [#allocation6], 0 }
   0x6   :  { %13 = vsyncpa [#allocation6 + $0x1], 0 }
   0x7   :  { %14 = vsyncpa [#allocation4], 0 }
   0x8   :  { %16 = vsyncpa [#allocation4 + $0x1], 0  ;;  %s781_s12 = smov 0   ;;  %s783_s13 = smov 0  }
   0x9   :  { %s785_s14 = smov 0   ;;  %s787_s15 = smov 0  }
   0xa   :  { %s789_s16 = smov 0   ;;  %s791_s17 = smov 0  }
   0xb LB: > { %1046 = sst [smem:[#allocation12_spill]] %s742_s14  ;;  %s812_s18 = sadd.s32 4294967295, %s754_s17   ;;  %s754_s17 = sphi %s791_s17, %s22_s17   ;;  %s750_s16 = sphi %s789_s16, %s1073_s16   ;;  %s746_s15 = sphi %s787_s15, %s1072_s15   ;;  %s742_s14 = sphi %s785_s14, %s1068_s14   ;;  %s738_s13 = sphi %s783_s13, %s1071_s13   ;;  %s734_s12 = sphi %s781_s12, %s1070_s12  }
   0xc   : > { %s479_s19 = sadd.s32 4294967294, %s754_s17   ;;  %s31_s20 = sadd.s32 1, %s750_s16 }
   0xd   : > { %s43_s21 = sadd.s32 1, %s742_s14  ;;  %p32_p0 = scmp.ge.s32.totalorder %s31_s20, 4 }
   0xe   : > { %p50_p1 = scmp.ne.s32.totalorder %s742_s14, %s738_s13  ;;  %p51_p2 = scmp.eq.s32.totalorder %s754_s17, 0 }
   0xf   : > { %p56_p3 = scmp.ne.s32.totalorder %s738_s13, %s734_s12  ;;  %s1075_s20 = smov (%p32_p0, %s31_s20), 0 }
  0x10   : > { %1047 = sst [smem:[#allocation13_spill]] %s1075_s20  ;;  %p824_p4 = por %p51_p2, %p50_p1 }
  0x11   : > { %p57_p5 = scmp.eq.s32.totalorder %s812_s18, 0  ;;  %s39_s23 = ssub.s32 %s750_s16, %s1075_s20 }
  0x12   : > { %p136_p6 = scmp.eq.s32.totalorder %s812_s18, 3  ;;  %p41_p7 = scmp.eq.s32.totalorder %s39_s23, 0 }
  0x13   : > { %p832_p8 = por %p57_p5, %p56_p3  ;;  %p142_p10 = scmp.eq.s32.totalorder %s479_s19, 3 }
  0x14   : > { %p836_p9 = por %p136_p6, %p50_p1  ;;  %p527_p12 = scmp.lt.s32.totalorder %s754_s17, 4 }
  0x15   : > { %s1049_s24 = scalar_select %p832_p8, 1, 0 }
  0x16   : > { %s1050_s25 = scalar_select %p836_p9, 1, 0 }
  0x17   : > { %s841_s26 = scalar_select %p41_p7, %s742_s14, %s43_s21  }
  0x18   : > { %p843_p11 = por %p142_p10, %p56_p3  ;;  %s849_s28 = sand.u32 1, %s742_s14  }
  0x19   : > { %1051 = sst [smem:[#allocation14_spill]] %s841_s26  ;;  %s482_s29 = sshll.u32 %s849_s28, 2 }
  0x1a   : > { %s1052_s27 = scalar_select %p843_p11, 1, 0 }
  0x1b   : > { %s501_s30 = sshll.u32 %s750_s16, 6  ;;  %p855_p13 = pnand %p527_p12, %p824_p4 }
  0x1c   : > { %s183_s5 = sand.u32 1, %s754_s17   ;;  %s1054_s1 = sld [smem:[#allocation16_spill]] }
  0x1d   : > { %s1053_s4 = scalar_select %p855_p13, 1, 0 }
  0x1e   : > { %s187_s9 = scalar_lea.vmem [#allocation5], %s482_s29  ;;  %s873_s11 = scalar_lea.sflag [#allocation6], %s183_s5 }
  0x1f   : > { %s197_s10 = sshll.u32 %s187_s9, 4  ;;  %p879_p3 = pneg %p855_p13  ;;  %s870_s10 = int_to_ptr.vmem [resolvable:$true] %s197_s10 }
  0x22   : > { %s865_s8 = scalar_lea.hbm %s1054_s1, %s501_s30  ;;  %s583_s6 = scalar_lea.hbm %s1054_s1, 256 }
  0x23   : > { %s578_s19 = scalar_lea.hbm %s865_s8, 64  ;;  %p584_p6 = scmp.lt.u32.totalorder %s865_s8, %s1054_s1 }
  0x24   : > { %p579_p2 = scmp.ne.s32.totalorder %s865_s8, %s578_s19  ;;  %p585_p7 = scmp.lt.u32.totalorder %s583_s6, %s578_s19 }
  0x25   : > { %p587_p12 = scmp.lt.u32.totalorder %s578_s19, %s865_s8 }
  0x26   : > { %p581_p4 = pnand %p879_p3, %p579_p2  ;;  %p586_p10 = por %p585_p7, %p584_p6 }
  0x28   : > { %p582_p5 = pneg %p581_p4  ;;  %p588_p0 = por %p587_p12, %p586_p10 }
  0x2a   : > { %p589_p1 = pnand %p588_p0, %p582_p5 }
  0x2c   : > { %592 = shalt.err (!%p589_p1)
}
  0x2d   : > { %s593_s5 = scalar_lea.vmem %s870_s10, 64  ;;  %s756_s22 = smov [#allocation5]  }
  0x2e   : > { %p594_p2 = scmp.ne.s32.totalorder %s870_s10, %s593_s5  ;;  %s598_s23 = sshll.u32 %s756_s22, 4  ;;  %s599_s23 = int_to_ptr.vmem [resolvable:$false] %s598_s23 }
  0x2f   : > { %s600_s7 = scalar_lea.vmem %s599_s23, 128  ;;  %p601_p9 = scmp.lt.s32.totalorder %s870_s10, %s599_s23 }
  0x30   : > { %p596_p4 = pnand %p594_p2, %p879_p3  ;;  %p602_p8 = scmp.lt.s32.totalorder %s600_s7, %s593_s5 }
  0x32   : > { %p597_p11 = pneg %p596_p4  ;;  %p603_p6 = por %p602_p8, %p601_p9 }
  0x34   : > { %p604_p7 = pnand %p603_p6, %p597_p11 }
  0x36   : > { %607 = shalt.err (!%p604_p7)
}
  0x37   : > { %519 = dma.hbm_to_vmem [thread:$0]  (!%p855_p13), %s865_s8, 64, %s870_s10, %s873_s11  }
  0x38   : > { %p1056_p0 = scmp.lt.s32.totalorder %s754_s17, 5  ;;  %p1057_p1 = scmp.ge.s32.totalorder %s754_s17, 1 }
  0x39   : > { %s1059_s0 = sld [smem:[#allocation15_spill]]  ;;  %s166_s22 = scalar_lea.vmem [#allocation2], %s482_s29 }
  0x3a   : > { %p907_p5 = pnand %p1057_p1, %p1056_p0  ;;  %s176_s23 = sshll.u32 %s166_s22, 4  ;;  %s177_s23 = int_to_ptr.vmem [resolvable:$true] %s176_s23 }
  0x3b   : > { %s163_s10 = scalar_lea.sflag [#allocation3], %s849_s28 }
  0x3c   : > { %s1058_s19 = scalar_select %p907_p5, 1, 0 }
  0x3f   : > { %s916_s5 = scalar_lea.hbm %s1059_s0, %s501_s30  ;;  %s613_s30 = scalar_lea.hbm %s1059_s0, 256 }
  0x40   : > { %s608_s7 = scalar_lea.hbm %s916_s5, 64  ;;  %p614_p10 = scmp.lt.u32.totalorder %s916_s5, %s1059_s0 }
  0x41   : > { %p609_p8 = scmp.ne.s32.totalorder %s916_s5, %s608_s7  ;;  %p615_p12 = scmp.lt.u32.totalorder %s613_s30, %s608_s7 }
  0x42   : > { %p617_p4 = scmp.lt.u32.totalorder %s608_s7, %s916_s5 }
  0x43   : > { %p611_p9 = pnand %p609_p8, %p879_p3  ;;  %p616_p2 = por %p615_p12, %p614_p10 }
  0x45   : > { %p612_p11 = pneg %p611_p9  ;;  %p618_p6 = por %p617_p4, %p616_p2 }
  0x47   : > { %p619_p7 = pnand %p618_p6, %p612_p11 }
  0x49   : > { %622 = shalt.err (!%p619_p7)
}
  0x4a   : > { %s623_s29 = scalar_lea.vmem %s177_s23, 64  ;;  %s757_s22 = smov [#allocation2]  }
  0x4b   : > { %p624_p0 = scmp.ne.s32.totalorder %s177_s23, %s623_s29  ;;  %s628_s8 = sshll.u32 %s757_s22, 4  ;;  %s629_s8 = int_to_ptr.vmem [resolvable:$false] %s628_s8 }
  0x4c   : > { %s630_s1 = scalar_lea.vmem %s629_s8, 128  ;;  %p631_p9 = scmp.lt.s32.totalorder %s177_s23, %s629_s8 }
  0x4d   : > { %p626_p1 = pnand %p624_p0, %p879_p3  ;;  %p632_p5 = scmp.lt.s32.totalorder %s630_s1, %s623_s29 }
  0x4f   : > { %p627_p8 = pneg %p626_p1  ;;  %p633_p13 = por %p632_p5, %p631_p9 }
  0x51   : > { %p634_p10 = pnand %p633_p13, %p627_p8 }
  0x53   : > { %637 = shalt.err (!%p634_p10)
}
  0x54   : > { %p1060_p12 = scmp.ne.s32.totalorder %s1053_s4, 0  ;;  %s503_s20 = sshll.u32 %s750_s16, 5 }
  0x55   : > { %s1061_s7 = sshll.u32 %s849_s28, 1  ;;  %s214_s0 = scalar_lea.hbm %s1036_s2, %s503_s20 }
  0x56   : > { %516 = dma.hbm_to_vmem [thread:$0]  (!%p1060_p12), %s916_s5, 64, %s177_s23, %s163_s10  }
  0x57   : > { %s208_s30 = scalar_lea.vmem [#allocation7], %s1061_s7  ;;  %s638_s8 = scalar_lea.hbm %s214_s0, 32 }
  0x58   : > { %s216_s6 = sshll.u32 %s208_s30, 4  ;;  %p639_p5 = scmp.ne.s32.totalorder %s214_s0, %s638_s8  ;;  %s217_s6 = int_to_ptr.vmem [resolvable:$true] %s216_s6 }
  0x59   : > { %s643_s26 = scalar_lea.hbm %s1036_s2, 128  ;;  %p644_p2 = scmp.lt.u32.totalorder %s214_s0, %s1036_s2 }
  0x5a   : > { %p641_p13 = pnand %p639_p5, %p879_p3  ;;  %p645_p4 = scmp.lt.u32.totalorder %s643_s26, %s638_s8 }
  0x5b   : > { %p647_p7 = scmp.lt.u32.totalorder %s638_s8, %s214_s0 }
  0x5c   : > { %p642_p11 = pneg %p641_p13  ;;  %p646_p6 = por %p645_p4, %p644_p2 }
  0x5e   : > { %p648_p0 = por %p647_p7, %p646_p6 }
  0x60   : > { %p649_p1 = pnand %p648_p0, %p642_p11 }
  0x62   : > { %652 = shalt.err (!%p649_p1)
}
  0x63   : > { %s653_s28 = scalar_lea.vmem %s217_s6, 32  ;;  %s758_s23 = smov [#allocation7]  }
  0x64   : > { %p654_p8 = scmp.ne.s32.totalorder %s217_s6, %s653_s28  ;;  %s658_s10 = sshll.u32 %s758_s23, 4  ;;  %s659_s10 = int_to_ptr.vmem [resolvable:$false] %s658_s10 }
  0x65   : > { %s660_s20 = scalar_lea.vmem %s659_s10, 64  ;;  %p661_p5 = scmp.lt.s32.totalorder %s217_s6, %s659_s10 }
  0x66   : > { %p656_p9 = pnand %p654_p8, %p879_p3  ;;  %p662_p13 = scmp.lt.s32.totalorder %s660_s20, %s653_s28 }
  0x68   : > { %p657_p10 = pneg %p656_p9  ;;  %p663_p12 = por %p662_p13, %p661_p5 }
  0x6a   : > { %p664_p2 = pnand %p663_p12, %p657_p10 }
  0x6c   : > { %667 = shalt.err (!%p664_p2)
}
  0x6d   : > { %p1062_p4 = scmp.ne.s32.totalorder %s1053_s4, 0  ;;  %p1063_p11 = scmp.ne.s32.totalorder %s1058_s19, 0 }
  0x6e   : > { %s961_s14 = sand.u32 (!%p1063_p11), 1, %s738_s13   ;;  %p1064_p3 = scmp.ne.s32.totalorder (!%p1063_p11), %s1049_s24, 0 }
  0x6f   : > { %522 = dma.hbm_to_vmem [thread:$0]  (!%p1062_p4), %s214_s0, 32, %s217_s6, %s873_s11  }
  0x70   : > { %225 = sbr.rel (%p1063_p11) target bundleno = 160 (0xa0), region = 32  ;;  %s964_s26 = sshll.u32 (!%p1063_p11), %s961_s14, 2 }
  0x71   : > { %s228_s21 = scalar_lea.sflag (!%p1063_p11), [#allocation3], %s961_s14  ;;  %s231_s7 = scalar_lea.vmem (!%p1063_p11), [#allocation2], %s964_s26 }
  0x77   : > { %721 = dma.done.wait (%p1064_p3), %s228_s21, 64  }
  0x78   : > { %723 = vsyncadd (%p1064_p3), %s228_s21, 4294967232  ;;  %s236_s0 = sand.u32 1, %s812_s18   ;;  %s240_s11 = scalar_lea.vmem [#allocation5], %s964_s26 }
  0x79   : > { %s237_s4 = scalar_lea.sflag [#allocation6], %s236_s0 }
  0x7a   : > { %725 = dma.done.wait (%p1064_p3), %s237_s4, 96  }
  0x7b   : > { %727 = vsyncadd (%p1064_p3), %s237_s4, 4294967200  ;;  %v290_v0 = vlaneseq  ;;  %s494_s19 = sshll.u32 %s961_s14, 1  ;;  %v759_v1 = vmov 1983009808   ;;  %v287_v9 = vld [vmem:[%s240_s11] sm:$0xf] }
  0x7c   : > { %v302_v2 = vunpack.c.l.s4 %v759_v1  ;;  %s249_s30 = scalar_lea.vmem [#allocation7], %s494_s19  ;;  %v288_v10 = vmul.f32 0.5, %v287_v9  ;;  %s281_s18 = scalar_lea.vmem [#allocation8], %s964_s26  ;;  %v317_v22 = vld [vmem:[%s231_s7] sm:$0xf] }
  0x7d   : > { %v291_v3 = vshrl.u32 %v290_v0, 7  ;;  %v286_v8 = vld [vmem:[%s249_s30] sm:$0x3]  ;;  %s348_s24 = sshll.u32 %s281_s18, 4  ;;  %s504_s6 = sshll.u32 %s746_s15, 6  ;;  %s983_s24 = int_to_ptr.vmem [resolvable:$true] %s348_s24 }
  0x7e   : > { %v303_v4 = vunpack.c.0.s8 %v302_v2  ;;  %s988_s8 = scalar_lea.hbm %s1037_s3, %s504_s6  ;;  %s332_s29 = scalar_lea.sflag [#allocation4], %s961_s14 }
  0x7f   : > { %v292_v5 = vsub.s32 0, %v291_v3  ;;  %v296_v6 = vsub.s32 1, %v291_v3  ;;  %s668_s1 = scalar_lea.vmem %s983_s24, 64  ;;  %p1065_p6 = scmp.ne.s32.totalorder %s1050_s25, 0 }
  0x80   : > { %v306_v7 = vsub.s32 %v303_v4, %v291_v3  ;;  %p669_p12 = scmp.ne.s32.totalorder %s983_s24, %s668_s1  ;;  %s760_s15 = smov [#allocation8]  }
  0x81   : > { %v293_v11 = vrot.slane %v286_v8, %v292_v5  ;;  %v297_v12 = vrot.slane %v286_v8, %v296_v6  ;;  %s672_s5 = sshll.u32 %s760_s15, 4  ;;  %s673_s5 = int_to_ptr.vmem [resolvable:$false] %s672_s5 }
  0x82   : > { %v307_v13 = vrot.slane %v288_v10, %v306_v7  ;;  %p670_p7 = pnand %p669_p12, %p1065_p6  ;;  %s674_s28 = scalar_lea.vmem %s673_s5, 128 }
  0x83   : > { %p675_p1 = scmp.lt.s32.totalorder %s983_s24, %s673_s5  ;;  %p676_p8 = scmp.lt.s32.totalorder %s674_s28, %s668_s1 }
  0x84   : > { %v308_v14 = vcombine.high %v307_v13, %v307_v13  ;;  %v311_v15 = vadd.f32 %v307_v13, %v293_v11  ;;  %p671_p0 = pneg %p670_p7 }
  0x85   : > { %p677_p9 = por %p676_p8, %p675_p1 }
  0x86   : > { %v312_v16 = vadd.f32 %v308_v14, %v297_v12  ;;  %v313_v17 = vmax.f32 %v311_v15, 0.0 }
  0x87   : > { %p678_p10 = pnand %p677_p9, %p671_p0 }
  0x88   : > { %v314_v18 = vmax.f32 %v312_v16, 0.0  ;;  %v315_v19 = vmin.f32 %v313_v17, 1.0 }
  0x8a   : > { %v316_v20 = vmin.f32 %v314_v18, 1.0 }
  0x8c   : > { %v320_v21 = vcombine.low %v315_v19, %v316_v20 }
  0x8e   : > { %v327_v23 = vrot.slane %v320_v21, %v306_v7 }
  0x90   : > { %v329_v24 = vmul.f32 %v327_v23, %v317_v22 }
  0x92   : > { %330 = vst [vmem:[%s281_s18] sm:$0xf] %v329_v24 }
  0x93   : > { %681 = shalt.err (!%p678_p10)
}
  0x94   : > { %s682_s23 = scalar_lea.hbm %s988_s8, 64  ;;  %s686_s14 = scalar_lea.hbm %s1037_s3, 256 }
  0x95   : > { %p683_p5 = scmp.ne.s32.totalorder %s988_s8, %s682_s23  ;;  %p687_p4 = scmp.lt.u32.totalorder %s988_s8, %s1037_s3 }
  0x96   : > { %p688_p11 = scmp.lt.u32.totalorder %s686_s14, %s682_s23  ;;  %p690_p12 = scmp.lt.u32.totalorder %s682_s23, %s988_s8 }
  0x97   : > { %p684_p13 = pnand %p683_p5, %p1065_p6 }
  0x98   : > { %p689_p3 = por %p688_p11, %p687_p4 }
  0x99   : > { %p685_p2 = pneg %p684_p13 }
  0x9a   : > { %p691_p7 = por %p690_p12, %p689_p3 }
  0x9c   : > { %p692_p0 = pnand %p691_p7, %p685_p2 }
  0x9e   : > { %695 = shalt.err (!%p692_p0)
}
  0x9f   : > { %511 = dma.vmem_to_hbm [thread:$0]  (%p1065_p6), %s983_s24, 64, %s988_s8, %s332_s29  }
  0xa0 PF: > { %p528_p1 = scmp.ge.s32.totalorder %s754_s17, 2  ;;  %s360_s7 = sand.u32 1, %s734_s12  }
  0xa1   : > { %p1066_p8 = scmp.ne.s32.totalorder %s1052_s27, 0  ;;  %s361_s0 = scalar_lea.sflag [#allocation4], %s360_s7 }
  0xa3   : > { %p524_p9 = pnand %p528_p1, %p1066_p8 }
  0xa5   : > { %729 = dma.done.wait (!%p524_p9), %s361_s0, 64  }
  0xa6   : > { %731 = vsyncadd (!%p524_p9), %s361_s0, 4294967232  ;;  %s22_s17 = sadd.s32 1, %s754_s17   ;;  %s1067_s4 = sld [smem:[#allocation12_spill]] }
  0xa7   : > { %p19_p10 = scmp.ge.s32.totalorder %s22_s17, 6   ;;  %s1068_s14 = sld [smem:[#allocation14_spill]] }
  0xa8   : > { %s1069_s25 = sld [smem:[#allocation13_spill]]  ;;  %s1070_s12 = smov %s738_s13 }
  0xa9   : > { %s1072_s15 = smov %s750_s16  ;;  %21 = sbr.rel (!%p19_p10) target bundleno = 11 (0xb), region = 101 }
  0xac   : > { %s1071_s13 = smov %s1067_s4 }
  0xae   : > { %s1073_s16 = smov %s1069_s25 }
  0xb0   :  { %366 = vsyncpa [#allocation3], 1 }
  0xb1   :  { %368 = vsyncpa [#allocation3 + $0x1], 1 }
  0xb2   :  { %369 = vsyncpa [#allocation6], 1 }
  0xb3   :  { %371 = vsyncpa [#allocation6 + $0x1], 1 }
  0xb4   :  { %372 = vsyncpa [#allocation4], 1 }
  0xb5   :  { %374 = vsyncpa [#allocation4 + $0x1], 1 }

</bundles_post_ra>
